<compile_context>
chip_gen: v5e
topology: v5e:2x2
jax: 0.10.0
libtpu: 0.0.40
codegen_flags: <defaults>
</compile_context>

<pallas_src>
import math
import jax
import jax.numpy as jnp
from jax.experimental import pallas as pl
from jax.experimental.pallas import tpu as pltpu


def _graph_conv_kernel(g_ref, b_ref, x_ref, o_ref):
    # g_ref: (c_in, N, NC)    fused graph+channel operator, NC = N*c_out
    # b_ref: (1, NC)          bias pre-tiled over nodes
    # x_ref: (1, c_in, TT, N) native-NCHW slab of one batch / time-chunk
    # o_ref: (1, TT, NC)      output slab, already in final fused layout
    xb = x_ref[0]                                                   # (c_in, TT, N)
    gb = g_ref[...]                                                 # (c_in, N, NC)
    c_in = xb.shape[0]
    # Static unrolled sum of small MXU matmuls; contraction depth = N per dot.
    acc = jnp.dot(xb[0], gb[0], preferred_element_type=jnp.float32)  # (TT, NC)
    for ci in range(1, c_in):
        acc = acc + jnp.dot(xb[ci], gb[ci], preferred_element_type=jnp.float32)
    o_ref[0] = (acc + b_ref[...]).astype(o_ref.dtype)               # lane-dense store


def _choose_time_block(T, N, c_out, vmem_cap_bytes=2 * 1024 * 1024):
    """Largest sublane-aligned (multiple of 8) time-chunk TT dividing T within a budget."""
    best = None
    tt = 8
    while tt <= T:
        if T % tt == 0 and tt * N * c_out * 4 <= vmem_cap_bytes:
            best = tt
        tt += 8
    # Sublane axis of a block must be a multiple of 8 unless it spans the full
    # array dim; fall back to TT == T (always a legal full-extent block).
    return best if best is not None else T


def graph_conv(x_nchw, gso, weight, bias=None):
    """x_nchw: (B, c_in, T, N); gso: (N, N); weight: (c_in, c_out); bias: (c_out,).

    Returns (B, T, N, c_out), matching PyTorch GraphConv.forward.
    """
    B, c_in, T, N = x_nchw.shape
    c_out = weight.shape[1]
    NC = N * c_out
    if bias is None:
        bias = jnp.zeros((c_out,), dtype=weight.dtype)

    TT = _choose_time_block(T, N, c_out)

    # Fused operator: G[ci, m, n*c_out + co] = gso[n, m] * W[ci, co]
    # (parameter-sized precompute; in a real model this is done once).
    G = jnp.einsum('nm,io->imno', gso, weight).reshape(c_in, N, NC).astype(jnp.float32)
    bias_row = jnp.tile(bias.astype(jnp.float32), N).reshape(1, NC)   # [bias]*N, index n*c_out+co

    grid = (B, T // TT)   # disjoint output blocks -> both axes parallel (megacore)

    out3 = pl.pallas_call(
        _graph_conv_kernel,
        out_shape=jax.ShapeDtypeStruct((B, T, NC), jnp.float32),
        grid_spec=pltpu.PrefetchScalarGridSpec(
            num_scalar_prefetch=0,
            grid=grid,
            in_specs=[
                pl.BlockSpec((c_in, N, NC), lambda b, t: (0, 0, 0)),       # G (shared)
                pl.BlockSpec((1, NC), lambda b, t: (0, 0)),                # bias row
                pl.BlockSpec((1, c_in, TT, N), lambda b, t: (b, 0, t, 0)),  # x (native NCHW)
            ],
            out_specs=pl.BlockSpec((1, TT, NC), lambda b, t: (b, t, 0)),
        ),
        compiler_params=pltpu.CompilerParams(
            dimension_semantics=("parallel", "parallel"),
            # Per-step footprint is tens of KiB here; limit kept well inside
            # v7x's 64 MiB physical VMEM (and v5e/v6e's 128 MiB).
            vmem_limit_bytes=32 * 1024 * 1024,
        ),
    )(G, bias_row, x_nchw)

    # Split the fused minor axis (n, c_out): layout-preserving reshape, no transpose.
    return out3.reshape(B, T, N, c_out)


def _reference(x_nchw, gso, weight, bias):
    x = jnp.transpose(x_nchw, (0, 2, 3, 1))
    first = jnp.einsum('hi,btij->bthj', gso, x)
    second = jnp.einsum('bthi,ij->bthj', first, weight)
    return second + bias


if __name__ == "__main__":
    # Small shapes consistent with the module: NCHW input (B, c_in, T, N).
    B, c_in, T, N, c_out = 2, 4, 8, 16, 8

    key = jax.random.PRNGKey(0)
    kx, kg, kw, kb = jax.random.split(key, 4)

    x = jax.random.normal(kx, (B, c_in, T, N), dtype=jnp.float32)
    gso = jax.random.normal(kg, (N, N), dtype=jnp.float32)

    # Deterministic param init mirroring kaiming_uniform_(a=sqrt(5)) / bias bound.
    fan_in = c_in
    gain = math.sqrt(2.0 / (1.0 + 5.0))          # leaky_relu gain with a=sqrt(5)
    w_bound = gain * math.sqrt(3.0 / fan_in)
    weight = jax.random.uniform(kw, (c_in, c_out), jnp.float32,
                                minval=-w_bound, maxval=w_bound)
    b_bound = 1.0 / math.sqrt(fan_in)
    bias = jax.random.uniform(kb, (c_out,), jnp.float32,
                              minval=-b_bound, maxval=b_bound)

    out = graph_conv(x, gso, weight, bias)
    jax.block_until_ready(out)

    ref = _reference(x, gso, weight, bias)
    assert out.shape == (B, T, N, c_out)
    assert jnp.allclose(out, ref, atol=1e-4, rtol=1e-4), "mismatch vs reference"

    print("KERNEL_OK")
</pallas_src>

<mosaic_0001>
module attributes {stable_mosaic.version = 11 : i64} {
  func.func @_graph_conv_kernel(%arg0: i32, %arg1: i32, %arg2: memref<4x16x128xf32, #tpu.memory_space<vmem>>, %arg3: memref<1x128xf32, #tpu.memory_space<vmem>>, %arg4: memref<1x4x8x16xf32, #tpu.memory_space<vmem>>, %arg5: memref<1x8x128xf32, #tpu.memory_space<vmem>>) attributes {dimension_semantics = [#tpu.dimension_semantics<parallel>, #tpu.dimension_semantics<parallel>], iteration_bounds = array<i64: 2, 1>, scalar_prefetch = 0 : i64, scratch_operands = 0 : i64, tpu.core_type = #tpu.core_type<tc>, window_params = [{pipeline_mode = #tpu.pipeline_mode<synchronous>, transform_indices = @transform_0, window_bounds = array<i64: 4, 16, 128>}, {pipeline_mode = #tpu.pipeline_mode<synchronous>, transform_indices = @transform_1, window_bounds = array<i64: 1, 128>}, {transform_indices = @transform_2, window_bounds = array<i64: 1, 4, 8, 16>}, {transform_indices = @transform_3, window_bounds = array<i64: 1, 8, 128>}]} {
    %c0 = arith.constant 0 : index
    %c0_0 = arith.constant 0 : index
    %c0_1 = arith.constant 0 : index
    %c0_2 = arith.constant 0 : index
    %0 = vector.load %arg4[%c0, %c0_0, %c0_1, %c0_2] : memref<1x4x8x16xf32, #tpu.memory_space<vmem>>, vector<1x4x8x16xf32>
    %1 = vector.shape_cast %0 : vector<1x4x8x16xf32> to vector<4x8x16xf32>
    %c0_3 = arith.constant 0 : index
    %c0_4 = arith.constant 0 : index
    %c0_5 = arith.constant 0 : index
    %2 = vector.load %arg2[%c0_3, %c0_4, %c0_5] : memref<4x16x128xf32, #tpu.memory_space<vmem>>, vector<4x16x128xf32>
    %3 = vector.extract_strided_slice %1 {offsets = [0, 0, 0], sizes = [1, 8, 16], strides = [1, 1, 1]} : vector<4x8x16xf32> to vector<1x8x16xf32>
    %4 = vector.shape_cast %3 : vector<1x8x16xf32> to vector<8x16xf32>
    %5 = vector.extract_strided_slice %2 {offsets = [0, 0, 0], sizes = [1, 16, 128], strides = [1, 1, 1]} : vector<4x16x128xf32> to vector<1x16x128xf32>
    %6 = vector.shape_cast %5 : vector<1x16x128xf32> to vector<16x128xf32>
    %cst = arith.constant dense<0.000000e+00> : vector<8x128xf32>
    %7 = tpu.matmul %4, %6, %cst {dimension_numbers = #tpu.dot_dimension_numbers<[1], [0], [0], [1], [0, 0, 1, 1], [], []>} : vector<8x16xf32>, vector<16x128xf32>, vector<8x128xf32> -> vector<8x128xf32>
    %8 = vector.extract_strided_slice %1 {offsets = [1, 0, 0], sizes = [1, 8, 16], strides = [1, 1, 1]} : vector<4x8x16xf32> to vector<1x8x16xf32>
    %9 = vector.shape_cast %8 : vector<1x8x16xf32> to vector<8x16xf32>
    %10 = vector.extract_strided_slice %2 {offsets = [1, 0, 0], sizes = [1, 16, 128], strides = [1, 1, 1]} : vector<4x16x128xf32> to vector<1x16x128xf32>
    %11 = vector.shape_cast %10 : vector<1x16x128xf32> to vector<16x128xf32>
    %cst_6 = arith.constant dense<0.000000e+00> : vector<8x128xf32>
    %12 = tpu.matmul %9, %11, %cst_6 {dimension_numbers = #tpu.dot_dimension_numbers<[1], [0], [0], [1], [0, 0, 1, 1], [], []>} : vector<8x16xf32>, vector<16x128xf32>, vector<8x128xf32> -> vector<8x128xf32>
    %13 = arith.addf %7, %12 : vector<8x128xf32>
    %14 = vector.extract_strided_slice %1 {offsets = [2, 0, 0], sizes = [1, 8, 16], strides = [1, 1, 1]} : vector<4x8x16xf32> to vector<1x8x16xf32>
    %15 = vector.shape_cast %14 : vector<1x8x16xf32> to vector<8x16xf32>
    %16 = vector.extract_strided_slice %2 {offsets = [2, 0, 0], sizes = [1, 16, 128], strides = [1, 1, 1]} : vector<4x16x128xf32> to vector<1x16x128xf32>
    %17 = vector.shape_cast %16 : vector<1x16x128xf32> to vector<16x128xf32>
    %cst_7 = arith.constant dense<0.000000e+00> : vector<8x128xf32>
    %18 = tpu.matmul %15, %17, %cst_7 {dimension_numbers = #tpu.dot_dimension_numbers<[1], [0], [0], [1], [0, 0, 1, 1], [], []>} : vector<8x16xf32>, vector<16x128xf32>, vector<8x128xf32> -> vector<8x128xf32>
    %19 = arith.addf %13, %18 : vector<8x128xf32>
    %20 = vector.extract_strided_slice %1 {offsets = [3, 0, 0], sizes = [1, 8, 16], strides = [1, 1, 1]} : vector<4x8x16xf32> to vector<1x8x16xf32>
    %21 = vector.shape_cast %20 : vector<1x8x16xf32> to vector<8x16xf32>
    %22 = vector.extract_strided_slice %2 {offsets = [3, 0, 0], sizes = [1, 16, 128], strides = [1, 1, 1]} : vector<4x16x128xf32> to vector<1x16x128xf32>
    %23 = vector.shape_cast %22 : vector<1x16x128xf32> to vector<16x128xf32>
    %cst_8 = arith.constant dense<0.000000e+00> : vector<8x128xf32>
    %24 = tpu.matmul %21, %23, %cst_8 {dimension_numbers = #tpu.dot_dimension_numbers<[1], [0], [0], [1], [0, 0, 1, 1], [], []>} : vector<8x16xf32>, vector<16x128xf32>, vector<8x128xf32> -> vector<8x128xf32>
    %25 = arith.addf %19, %24 : vector<8x128xf32>
    %c0_9 = arith.constant 0 : index
    %c0_10 = arith.constant 0 : index
    %26 = vector.load %arg3[%c0_9, %c0_10] : memref<1x128xf32, #tpu.memory_space<vmem>>, vector<1x128xf32>
    %27 = vector.broadcast %26 : vector<1x128xf32> to vector<8x128xf32>
    %28 = arith.addf %25, %27 : vector<8x128xf32>
    %c0_11 = arith.constant 0 : index
    %c0_12 = arith.constant 0 : index
    %c0_13 = arith.constant 0 : index
    %29 = vector.load %arg5[%c0_11, %c0_12, %c0_13] : memref<1x8x128xf32, #tpu.memory_space<vmem>>, vector<1x8x128xf32>
    %30 = vector.shape_cast %29 : vector<1x8x128xf32> to vector<8x128xf32>
    %31 = vector.shape_cast %28 : vector<8x128xf32> to vector<1x8x128xf32>
    tpu.vector_store %arg5[%c0_11, %c0_12, %c0_13], %31 {strides = array<i32>} : memref<1x8x128xf32, #tpu.memory_space<vmem>>, vector<1x8x128xf32>,
    return
  }
  func.func @transform_0(%arg0: i32, %arg1: i32) -> (i32, i32, i32) {
    %c0_i32 = arith.constant 0 : i32
    %c0_i32_0 = arith.constant 0 : i32
    %c0_i32_1 = arith.constant 0 : i32
    %c0_i32_2 = arith.constant 0 : i32
    return %c0_i32, %c0_i32_0, %c0_i32_1 : i32, i32, i32
  }
  func.func @transform_1(%arg0: i32, %arg1: i32) -> (i32, i32) {
    %c0_i32 = arith.constant 0 : i32
    %c0_i32_0 = arith.constant 0 : i32
    %c0_i32_1 = arith.constant 0 : i32
    return %c0_i32, %c0_i32_0 : i32, i32
  }
  func.func @transform_2(%arg0: i32, %arg1: i32) -> (i32, i32, i32, i32) {
    %c0_i32 = arith.constant 0 : i32
    %c0_i32_0 = arith.constant 0 : i32
    %c0_i32_1 = arith.constant 0 : i32
    return %arg0, %c0_i32, %arg1, %c0_i32_0 : i32, i32, i32, i32
  }
  func.func @transform_3(%arg0: i32, %arg1: i32) -> (i32, i32, i32) {
    %c0_i32 = arith.constant 0 : i32
    %c0_i32_0 = arith.constant 0 : i32
    return %arg0, %arg1, %c0_i32 : i32, i32, i32
  }
}

</mosaic_0001>

<bundles_post_ra>
// kernel: tpu_custom_call.1
= control target key start
LH: loop header
LB: loop body
LE: loop exit
PB: predicated region body
PF: predicated region fallthrough
CT: control target
= control target key end

     0   :  { %s948_s0 = inlined_call_operand.hbm [shape: f32[4,16,128], index: 0, kind: input, shape index: {}]   ;;  %s949_s1 = inlined_call_operand.hbm [shape: f32[1,128], index: 1, kind: input, shape index: {}]   ;;  %s950_s2 = inlined_call_operand.hbm [shape: f32[2,4,8,16], index: 2, kind: input, shape index: {}]   ;;  %s951_s3 = inlined_call_operand.hbm [shape: f32[2,8,128], index: 3, kind: output, shape index: {}]  }
   0x1   :  { %954 = sst [smem:[#allocation13_spill]] %s948_s0 }
   0x2   :  { %8 = vsyncpa [#allocation3], 0 }
   0x3   :  { %9 = vsyncpa [#allocation6], 0 }
   0x4   :  { %10 = vsyncpa [#allocation4], 0 }
   0x5   :  { %12 = vsyncpa [#allocation4 + $0x1], 0  ;;  %s782_s12 = smov 0   ;;  %s784_s13 = smov 0  }
   0x6   :  { %s786_s14 = smov 0   ;;  %s788_s15 = smov 0  }
   0x7   :  { %s790_s16 = smov 0   ;;  %s792_s17 = smov 0  }
   0x8 LB: > { %s813_s18 = sadd.s32 4294967295, %s756_s17   ;;  %s468_s19 = sadd.s32 4294967294, %s756_s17   ;;  %s756_s17 = sphi %s792_s17, %s18_s17   ;;  %s752_s16 = sphi %s790_s16, %s967_s16   ;;  %s748_s15 = sphi %s788_s15, %s966_s15   ;;  %s744_s14 = sphi %s786_s14, %s965_s14   ;;  %s740_s13 = sphi %s784_s13, %s964_s13   ;;  %s736_s12 = sphi %s782_s12, %s963_s12  }
   0x9   : > { %p94_p0 = scmp.ne.s32.totalorder %s740_s13, %s736_s12  ;;  %p95_p1 = scmp.eq.s32.totalorder %s813_s18, 0 }
   0xa   : > { %p120_p2 = scmp.eq.s32.totalorder %s813_s18, 1  ;;  %p126_p3 = scmp.eq.s32.totalorder %s468_s19, 1 }
   0xb   : > { %p822_p4 = por %p95_p1, %p94_p0  ;;  %p469_p5 = scmp.ge.s32.totalorder %s756_s17, 1 }
   0xc   : > { %p827_p6 = por %p126_p3, %p94_p0  ;;  %p133_p7 = scmp.lt.s32.totalorder %s756_s17, 3 }
   0xd   : > { %s957_s0 = sld [smem:[#allocation13_spill]]  ;;  %s758_s26 = smov [#allocation2]  }
   0xe   : > { %p835_p8 = pnand %p469_p5, %p133_p7  ;;  %s146_s27 = sshll.u32 %s758_s26, 4  ;;  %s147_s27 = int_to_ptr.vmem [resolvable:$true] %s146_s27 }
   0xf   : > { %p472_p11 = scmp.ge.s32.totalorder %s756_s17, 2  ;;  %s159_s30 = sshll.u32 %s949_s1, 4  ;;  %s160_s30 = int_to_ptr.hbm [resolvable:$true] %s159_s30 }
  0x10   : > { %p502_p9 = pneg %p835_p8  ;;  %s952_s4 = smov 128  }
  0x11   : > { %s953_s5 = smov 8   ;;  %s761_s6 = smov [#allocation5]  }
  0x12   : > { %p503_p10 = pnand %p502_p9, %p95_p1  ;;  %s161_s7 = sshll.u32 %s761_s6, 4  ;;  %s162_s7 = int_to_ptr.vmem [resolvable:$true] %s161_s7 }
  0x13   : > { %s144_s24 = sshll.u32 %s957_s0, 4  ;;  %s30_s8 = sadd.s32 1, %s752_s16  ;;  %s145_s24 = int_to_ptr.hbm [resolvable:$true] %s144_s24 }
  0x14   : > { %505 = dma.hbm_to_vmem [thread:$0]  (!%p503_p10), %s145_s24, 1024, %s147_s27, [#allocation3], %s952_s4, %s952_s4, %s953_s5  }
  0x15   : > { %508 = dma.hbm_to_vmem [thread:$0]  (!%p503_p10), %s160_s30, 16, %s162_s7, [#allocation6]  }
  0x16   : > { %s81_s9 = sadd.s32 1, %s744_s14  ;;  %p32_p12 = scmp.ge.s32.totalorder %s30_s8, 2 }
  0x17   : > { %p88_p13 = scmp.ne.s32.totalorder %s744_s14, %s740_s13  ;;  %p89_p0 = scmp.eq.s32.totalorder %s756_s17, 0 }
  0x18   : > { %p519_p3 = scmp.lt.s32.totalorder %s756_s17, 2  ;;  %s969_s8 = smov (%p32_p12, %s30_s8), 0 }
  0x19   : > { %p858_p5 = por %p89_p0, %p88_p13  ;;  %p864_p7 = por %p120_p2, %p88_p13 }
  0x1a   : > { %s76_s19 = ssub.s32 %s752_s16, %s969_s8  ;;  %s172_s22 = sand.u32 1, %s756_s17  }
  0x1b   : > { %p79_p9 = scmp.eq.s32.totalorder %s76_s19, 0  ;;  %s174_s23 = sand.u32 1, %s744_s14  }
  0x1c   : > { %s489_s24 = sshll.u32 %s752_s16, 5  ;;  %s473_s27 = sshll.u32 %s174_s23, 5 }
  0x1d   : > { %s874_s26 = scalar_select %p79_p9, %s744_s14, %s81_s9  }
  0x1e   : > { %s182_s30 = scalar_lea.hbm %s950_s2, %s489_s24  ;;  %s176_s7 = scalar_lea.vmem [#allocation7], %s473_s27 }
  0x1f   : > { %s183_s6 = sshll.u32 %s182_s30, 4  ;;  %s185_s4 = sshll.u32 %s176_s7, 4  ;;  %s184_s6 = int_to_ptr.hbm [resolvable:$true] %s183_s6  ;;  %s186_s4 = int_to_ptr.vmem [resolvable:$true] %s185_s4 }
  0x20   : > { %p510_p2 = pnand %p519_p3, %p858_p5  ;;  %s173_s5 = scalar_lea.sflag [#allocation3], %s172_s22 }
  0x21   : > { %s961_s0 = smov 8   ;;  %s962_s19 = smov 128  }
  0x22   : > { %512 = dma.hbm_to_vmem [thread:$0]  (!%p510_p2), %s184_s6, 512, %s186_s4, %s173_s5, %s962_s19, %s962_s19, %s961_s0  }
  0x23   : > { %197 = sbr.rel (%p835_p8) target bundleno = 193 (0xc1), region = 32 }
  0x28   : > { %719 = dma.done.wait (%p95_p1), [#allocation3], 1024  }
  0x29   : > { %721 = vsyncadd (%p95_p1), [#allocation3], 4294966272 }
  0x2a   : > { %723 = dma.done.wait (%p95_p1), [#allocation6], 16  }
  0x2b   : > { %725 = vsyncadd (%p95_p1), [#allocation6], 4294967280  ;;  %s209_s9 = sand.u32 1, %s813_s18   ;;  %s898_s0 = sand.u32 1, %s740_s13  }
  0x2c   : > { %s479_s25 = sshll.u32 %s898_s0, 5  ;;  %s210_s4 = scalar_lea.sflag [#allocation3], %s209_s9 }
  0x2d   : > { %s213_s5 = scalar_lea.vmem [#allocation7], %s479_s25 }
  0x2e   : > { %727 = dma.done.wait (%p822_p4), %s210_s4, 512  }
  0x2f   : > { %729 = vsyncadd (%p822_p4), %s210_s4, 4294966784  ;;  %v246_v0 = vld [vmem:[#allocation2 + $0x28] sm:$0xff]  ;;  %v245_v1 = vld [vmem:[#allocation2 + $0x20] sm:$0xff]  ;;  %vm249_vm0 = vcmask 130048   ;;  %s480_s18 = sshll.u32 %s898_s0, 3  ;;  %s486_s20 = sshll.u32 %s748_s15, 3 }
  0x30   : > { %v248_v2 = vld [vmem:[#allocation2 + $0x38] sm:$0xff]  ;;  %313 = vmatpush.msra.mxu2 %v246_v0  ;;  %v242_v5 = vld [vmem:[#allocation2 + $0x8] sm:$0xff]  ;;  %v247_v6 = vld [vmem:[#allocation2 + $0x30] sm:$0xff]  ;;  %s362_s23 = scalar_lea.hbm %s951_s3, %s486_s20  ;;  %s236_s24 = scalar_lea.vmem [#allocation8], %s480_s18 }
  0x31   : > { %337 = vmatpush.msra.mxu3 %v248_v2  ;;  %v239_v3 = vld [vmem:[%s213_s5 + $0x10] sm:$0xff]  ;;  %290 = vmatpush.msra.mxu1 %v242_v5  ;;  %v240_v7 = vld [vmem:[%s213_s5 + $0x18] sm:$0xff]  ;;  %v238_v10 = vld [vmem:[%s213_s5 + $0x8] sm:$0xff]  ;;  %s364_s27 = sshll.u32 %s236_s24, 4  ;;  %s366_s28 = sshll.u32 %s362_s23, 4  ;;  %s365_s27 = int_to_ptr.vmem [resolvable:$true] %s364_s27  ;;  %s367_s28 = int_to_ptr.hbm [resolvable:$true] %s366_s28 }
  0x32   : > { %v244_v4 = vld [vmem:[#allocation2 + $0x18] sm:$0xff]  ;;  %v243_v8 = vld [vmem:[#allocation2 + $0x10] sm:$0xff]  ;;  %314 = vmatpush.msra.mxu2 %v245_v1  ;;  %v241_v9 = vld [vmem:[#allocation2] sm:$0xff]  ;;  %s351_s29 = scalar_lea.sflag [#allocation4], %s898_s0  ;;  %s680_s15 = sshra.s32 %s367_s28, 4  ;;  %s681_s15 = int_to_ptr.hbm [resolvable:$true] %s680_s15 }
  0x33   : > { %267 = vmatpush.msra.mxu0 %v244_v4  ;;  %338 = vmatpush.msra.mxu3 %v247_v6  ;;  %v237_v11 = vld [vmem:[%s213_s5] sm:$0xff]  ;;  %v575_v18 = vld [vmem:[#allocation5] ss:$0 sm:$0xff]  ;;  %s682_s30 = scalar_lea.hbm %s681_s15, 8  ;;  %s686_s19 = scalar_lea.hbm %s951_s3, 16 }
  0x34   : > { %483 = vmatmul.msk.f32.vlgmr.msra.gmra.mxu2 %vm249_vm0, %v239_v3  ;;  %484 = vmatmul.msk.f32.vlgmr.msra.gmra.mxu3 %vm249_vm0, %v240_v7  ;;  %p683_p1 = scmp.ne.s32.totalorder %s681_s15, %s682_s30  ;;  %p687_p10 = scmp.lt.s32.totalorder %s681_s15, %s951_s3 }
  0x35   : > { %268 = vmatpush.msra.mxu0 %v243_v8  ;;  %291 = vmatpush.msra.mxu1 %v241_v9  ;;  %p688_p12 = scmp.lt.s32.totalorder %s686_s19, %s682_s30 }
  0x36   : > { %481 = vmatmul.msk.f32.vlgmr.msra.gmra.mxu0 %vm249_vm0, %v238_v10  ;;  %482 = vmatmul.msk.f32.vlgmr.msra.gmra.mxu1 %vm249_vm0, %v237_v11  ;;  %p684_p4 = pnand %p683_p1, %p864_p7 }
  0x37   : > { %p689_p13 = por %p688_p12, %p687_p10 }
  0x38   : > { %p685_p8 = pneg %p684_p4 }
  0x3a   : > { %p690_p0 = pnand %p689_p13, %p685_p8 }
  0xb3   : > { %v270_v12 = vpop.f32.mrf.mxu0  ;;  %v293_v13 = vpop.f32.mrf.mxu1 }
  0xb4   : > { %v294_v14 = vadd.f32 %v293_v13, %v270_v12 }
  0xb7   : > { %v316_v15 = vpop.f32.mrf.mxu2  ;;  %v340_v16 = vpop.f32.mrf.mxu3 }
  0xb8   : > { %v319_v17 = vadd.f32 %v316_v15, %v294_v14 }
  0xba   : > { %v343_v19 = vadd.f32 %v340_v16, %v319_v17 }
  0xbc   : > { %v348_v20 = vadd.f32 %v575_v18, %v343_v19 }
  0xbe   : > { %349 = vst [vmem:[%s236_s24] sm:$0xff] %v348_v20 }
  0xbf   : > { %693 = shalt.err (!%p690_p0)
}
  0xc0   : > { %500 = dma.vmem_to_hbm [thread:$0]  (%p864_p7), %s365_s27, 128, %s367_s28, %s351_s29  }
  0xc1 PF: > { %s378_s0 = sand.u32 1, %s736_s12   ;;  %p514_p3 = pnand %p472_p11, %p827_p6 }
  0xc2   : > { %s379_s4 = scalar_lea.sflag [#allocation4], %s378_s0 }
  0xc3   : > { %p515_p5 = pneg %p514_p3 }
  0xc5   : > { %731 = dma.done.wait (%p515_p5), %s379_s4, 128  }
  0xc6   : > { %733 = vsyncadd (%p515_p5), %s379_s4, 4294967168  ;;  %s18_s17 = sadd.s32 1, %s756_s17   ;;  %s963_s12 = smov %s740_s13 }
  0xc7   : > { %p15_p9 = scmp.ge.s32.totalorder %s18_s17, 4   ;;  %s964_s13 = smov %s744_s14 }
  0xc8   : > { %s965_s14 = smov %s874_s26  ;;  %s966_s15 = smov %s752_s16 }
  0xc9   : > { %s967_s16 = smov %s969_s8  ;;  %17 = sbr.rel (!%p15_p9) target bundleno = 8 (0x8), region = 84 }
  0xce   :  { %385 = vsyncpa [#allocation3], 1 }
  0xcf   :  { %387 = vsyncpa [#allocation3 + $0x1], 1 }
  0xd0   :  { %388 = vsyncpa [#allocation6], 1 }
  0xd1   :  { %389 = vsyncpa [#allocation4], 1 }
  0xd2   :  { %391 = vsyncpa [#allocation4 + $0x1], 1 }

</bundles_post_ra>
